<compile_context>
chip_gen: v5e
topology: v5e:2x2
jax: 0.10.0
libtpu: 0.0.40
codegen_flags: <defaults>
</compile_context>

<pallas_src>
import functools

import jax
import jax.numpy as jnp
from jax.experimental import pallas as pl
from jax.experimental.pallas import tpu as pltpu

_LANES = 128


def _cdiv(a: int, b: int) -> int:
    return -(-a // b)


def _round_up(a: int, b: int) -> int:
    return _cdiv(a, b) * b


def _h_swish_kernel(x_ref, o_ref):
    x = x_ref[...]
    # h_sigmoid(x) = relu6(x + 3) / 6 ; h_swish(x) = x * h_sigmoid(x)
    hs = jnp.clip(x + 3.0, 0.0, 6.0) * (1.0 / 6.0)
    o_ref[...] = (x * hs).astype(o_ref.dtype)


@functools.lru_cache(maxsize=None)
def _chip_info():
    """Best-effort TPU generation detection: (tensorcores_per_chip, is_v7x)."""
    try:
        kind = jax.devices()[0].device_kind.lower()
    except Exception:
        return 1, False
    is_v7x = ("v7" in kind) or ("7x" in kind)
    return (2 if is_v7x else 1), is_v7x


def h_swish(x: jnp.ndarray) -> jnp.ndarray:
    """Elementwise h_swish; hot path runs in Pallas. Expects float dtypes."""
    orig_shape = x.shape
    orig_dtype = x.dtype
    n = x.size
    if n == 0:
        return x

    if not jnp.issubdtype(orig_dtype, jnp.floating):
        # Module is defined for float activations; plain-JAX float fallback.
        xf = x.astype(jnp.float32)
        return xf * jnp.clip(xf + 3.0, 0.0, 6.0) * (1.0 / 6.0)

    num_cores, is_v7x = _chip_info()
    itemsize = jnp.dtype(orig_dtype).itemsize
    # Sublane granularity by dtype width: 8 (4B), 16 (2B), 32 (1B).
    sublanes = max(8, 32 // max(itemsize, 1))
    row_bytes = _LANES * itemsize

    if is_v7x:
        # 64 MiB physical VMEM/TC, 3.2 TB/s HBM: larger blocks amortize the
        # per-step overhead; 4x block footprint (32 MiB) stays under the limit.
        block_bytes = 8 * 1024 * 1024
        vmem_limit = 48 * 1024 * 1024
    else:
        # v5e/v6e: 128 MiB physical VMEM, single TensorCore.
        block_bytes = 4 * 1024 * 1024
        vmem_limit = 64 * 1024 * 1024

    rows = _cdiv(n, _LANES)  # logical 128-lane rows
    block_rows_cap = max(
        sublanes, (block_bytes // row_bytes) // sublanes * sublanes
    )

    # Near-equal blocks. Only force >=1 block per TensorCore when >1 TC exists
    # (v7x); on single-TC chips the grid is a serial loop and splitting a
    # one-block tensor is pure per-step overhead.
    steps = max(num_cores, _cdiv(rows, block_rows_cap))
    block_rows = max(
        sublanes, min(block_rows_cap, _round_up(_cdiv(rows, steps), sublanes))
    )

    flat = x.reshape(-1)
    cost = pl.CostEstimate(
        flops=5 * n, transcendentals=0, bytes_accessed=2 * n * itemsize
    )

    if n % _LANES == 0:
        # Lane-dense 2-D layout; a ragged last *row* block is masked by Pallas.
        x_op = flat.reshape(rows, _LANES)
        block_shape = (block_rows, _LANES)
        index_map = lambda i: (i, 0)
        grid = (_cdiv(rows, block_rows),)
        out_shape = jax.ShapeDtypeStruct((rows, _LANES), orig_dtype)
    else:
        # Unaligned element count: run on the flat 1-D array and let Pallas
        # mask the ragged last block -> no wrapper-side pad/slice HBM passes.
        block_elems = block_rows * _LANES
        x_op = flat
        block_shape = (block_elems,)
        index_map = lambda i: (i,)
        grid = (_cdiv(n, block_elems),)
        out_shape = jax.ShapeDtypeStruct((n,), orig_dtype)

    out = pl.pallas_call(
        _h_swish_kernel,
        out_shape=out_shape,
        grid_spec=pltpu.PrefetchScalarGridSpec(
            num_scalar_prefetch=0,
            grid=grid,
            in_specs=[pl.BlockSpec(block_shape, index_map)],
            out_specs=pl.BlockSpec(block_shape, index_map),
        ),
        compiler_params=pltpu.CompilerParams(
            dimension_semantics=("parallel",),
            vmem_limit_bytes=vmem_limit,
        ),
        cost_estimate=cost,
    )(x_op)

    return out.reshape(orig_shape)


if __name__ == "__main__":
    key = jax.random.PRNGKey(0)
    # Small NCHW input consistent with the PyTorch module's usage.
    x = jax.random.normal(key, (2, 4, 16, 16), dtype=jnp.float32) * 4.0

    y = jax.block_until_ready(h_swish(x))
    y_ref = x * jnp.clip(x + 3.0, 0.0, 6.0) / 6.0
    assert y.shape == x.shape and y.dtype == x.dtype
    assert jnp.allclose(y, y_ref, atol=1e-6, rtol=1e-6)

    # Unaligned element count -> ragged 1-D block path (no pad, no slice).
    x2 = jax.random.normal(jax.random.PRNGKey(0), (3, 5, 7, 11), dtype=jnp.float32) * 4.0
    y2 = jax.block_until_ready(h_swish(x2))
    y2_ref = x2 * jnp.clip(x2 + 3.0, 0.0, 6.0) / 6.0
    assert y2.shape == x2.shape and y2.dtype == x2.dtype
    assert jnp.allclose(y2, y2_ref, atol=1e-6, rtol=1e-6)

    # bf16 exercises the dtype-dependent sublane rounding.
    xb = x.astype(jnp.bfloat16)
    yb = jax.block_until_ready(h_swish(xb))
    yb_ref = xb * jnp.clip(xb + 3.0, 0.0, 6.0) / 6.0
    assert yb.shape == xb.shape and yb.dtype == jnp.bfloat16
    assert jnp.allclose(
        yb.astype(jnp.float32), yb_ref.astype(jnp.float32), atol=2e-2, rtol=2e-2
    )

    print("KERNEL_OK")
</pallas_src>

<mosaic_0001>
module attributes {stable_mosaic.version = 11 : i64} {
  func.func @_h_swish_kernel(%arg0: i32, %arg1: memref<16x128xf32, #tpu.memory_space<vmem>>, %arg2: memref<16x128xf32, #tpu.memory_space<vmem>>) attributes {dimension_semantics = [#tpu.dimension_semantics<parallel>], iteration_bounds = array<i64: 1>, scalar_prefetch = 0 : i64, scratch_operands = 0 : i64, tpu.core_type = #tpu.core_type<tc>, window_params = [{transform_indices = @transform_0, window_bounds = array<i64: 16, 128>}, {transform_indices = @transform_1, window_bounds = array<i64: 16, 128>}]} {
    %c0 = arith.constant 0 : index
    %c0_0 = arith.constant 0 : index
    %0 = vector.load %arg1[%c0, %c0_0] : memref<16x128xf32, #tpu.memory_space<vmem>>, vector<16x128xf32>
    %cst = arith.constant 3.000000e+00 : f32
    %1 = vector.broadcast %cst : f32 to vector<16x128xf32>
    %2 = arith.addf %0, %1 : vector<16x128xf32>
    %cst_1 = arith.constant 0.000000e+00 : f32
    %cst_2 = arith.constant 6.000000e+00 : f32
    %3 = vector.broadcast %cst_1 : f32 to vector<16x128xf32>
    %4 = arith.maximumf %3, %2 : vector<16x128xf32>
    %5 = vector.broadcast %cst_2 : f32 to vector<16x128xf32>
    %6 = arith.minimumf %5, %4 : vector<16x128xf32>
    %cst_3 = arith.constant 0.166666672 : f32
    %7 = vector.broadcast %cst_3 : f32 to vector<16x128xf32>
    %8 = arith.mulf %6, %7 : vector<16x128xf32>
    %9 = arith.mulf %0, %8 : vector<16x128xf32>
    %c0_4 = arith.constant 0 : index
    %c0_5 = arith.constant 0 : index
    %10 = vector.load %arg2[%c0_4, %c0_5] : memref<16x128xf32, #tpu.memory_space<vmem>>, vector<16x128xf32>
    tpu.vector_store %arg2[%c0_4, %c0_5], %9 {strides = array<i32>} : memref<16x128xf32, #tpu.memory_space<vmem>>, vector<16x128xf32>,
    return
  }
  func.func @transform_0(%arg0: i32) -> (i32, i32) {
    %c0_i32 = arith.constant 0 : i32
    %c0_i32_0 = arith.constant 0 : i32
    return %arg0, %c0_i32 : i32, i32
  }
  func.func @transform_1(%arg0: i32) -> (i32, i32) {
    %c0_i32 = arith.constant 0 : i32
    %c0_i32_0 = arith.constant 0 : i32
    return %arg0, %c0_i32 : i32, i32
  }
}

</mosaic_0001>

<bundles_post_ra>
// kernel: tpu_custom_call.1
= control target key start
LH: loop header
LB: loop body
LE: loop exit
PB: predicated region body
PF: predicated region fallthrough
CT: control target
= control target key end

     0   :  { %6 = vsyncpa [#allocation3], 0  ;;  %s134_s0 = inlined_call_operand.hbm [shape: f32[16,128], index: 0, kind: input, shape index: {}]   ;;  %s135_s1 = inlined_call_operand.hbm [shape: f32[16,128], index: 1, kind: output, shape index: {}]  }
   0x1   :  { %7 = vsyncpa [#allocation4], 0  ;;  %s12_s8 = sshll.u32 %s134_s0, 4  ;;  %s114_s9 = smov [#allocation2]   ;;  %s13_s8 = int_to_ptr.hbm [resolvable:$true] %s12_s8 }
   0x2   :  { %s14_s10 = sshll.u32 %s114_s9, 4  ;;  %s115_s11 = smov 128   ;;  %s15_s10 = int_to_ptr.vmem [resolvable:$true] %s14_s10 }
   0x3   :  { %s116_s12 = smov 8  }
   0x4   :  { %20 = dma.hbm_to_vmem [thread:$0]  %s13_s8, 256, %s15_s10, [#allocation3], %s115_s11, %s115_s11, %s116_s12  }
   0x5   :  { %110 = dma.done.wait [#allocation3], 256  }
   0x6   :  { %111 = vsyncadd [#allocation3], 4294967040  ;;  %v25_v0 = vld [vmem:[#allocation2] sm:$0xff]  ;;  %v26_v1 = vld [vmem:[#allocation2 + $0x8] sm:$0xff]  ;;  %s117_s0 = smov [#allocation5]   ;;  %s45_s16 = sshll.u32 %s135_s1, 4  ;;  %s46_s16 = int_to_ptr.hbm [resolvable:$true] %s45_s16 }
   0x7   :  { %v27_v2 = vadd.f32 3.0, %v25_v0  ;;  %v28_v3 = vadd.f32 3.0, %v26_v1  ;;  %s43_s13 = sshll.u32 %s117_s0, 4  ;;  %s44_s13 = int_to_ptr.vmem [resolvable:$true] %s43_s13 }
   0x9   :  { %v29_v4 = vmax.f32 %v27_v2, 0.0  ;;  %v30_v5 = vmax.f32 %v28_v3, 0.0 }
   0xb   :  { %v31_v6 = vmin.f32 %v29_v4, 6.0  ;;  %v32_v7 = vmin.f32 %v30_v5, 6.0 }
   0xd   :  { %v33_v8 = vmul.f32 0.16666667, %v31_v6  ;;  %v34_v9 = vmul.f32 0.16666667, %v32_v7 }
   0xf   :  { %v35_v10 = vmul.f32 %v33_v8, %v25_v0  ;;  %v36_v11 = vmul.f32 %v34_v9, %v26_v1 }
  0x11   :  { %37 = vst [vmem:[#allocation5] sm:$0xff] %v35_v10 }
  0x12   :  { %38 = vst [vmem:[#allocation5 + $0x8] sm:$0xff] %v36_v11 }
  0x13   :  { %51 = dma.vmem_to_hbm [thread:$0]  %s44_s13, 256, %s46_s16, [#allocation4], %s115_s11, %s115_s11, %s116_s12  }
  0x14   :  { %112 = dma.done.wait [#allocation4], 256  }
  0x15   :  { %113 = vsyncadd [#allocation4], 4294967040 }
  0x16   :  { %56 = vsyncpa [#allocation3], 1 }
  0x17   :  { %57 = vsyncpa [#allocation4], 1 }

</bundles_post_ra>
